<compile_context>
chip_gen: v7x
topology: tpu7x:2x2x1
jax: 0.10.0
libtpu: 0.0.40
codegen_flags: <defaults>
</compile_context>

<pallas_src>
import functools

import jax
import jax.numpy as jnp
from jax import lax
from jax.experimental import pallas as pl
from jax.experimental.pallas import tpu as pltpu

BETA = 1.0        # fDALLearner beta
REG_COEF = 1.0    # reg_coef (used inside fDALDivergenceHead and as gate)
GAMMA = 1.0       # fDALLoss gamma
MULTIPLIER = 1.0  # fDALLoss multiplier

# lane layout of the per-batch sums tile (row 0)
_LANE_SUM_V = 0     # sum over pixels of aux/domain logit v
_LANE_SUM_PHI = 1   # sum over pixels of phistar(v) = 0.25 v^2 + v (pearson)
_LANE_TASK_SUM = 2  # sum over pixels*K of the BCE-style task-loss term


# ---------------------------------------------------------------------------
# Fused kernel: backbone + taskhead + aux head + loss reductions.
# One grid step = (one batch element, one HW row tile).
# ---------------------------------------------------------------------------
def fused_fdal_kernel(x_ref, gb_ref, y_ref, w1_ref, wh_ref, bh_ref,
                      p_ref, sums_ref, acc_smem, *, num_src):
    b = pl.program_id(0)
    r = pl.program_id(1)

    @pl.when(r == 0)
    def _():
        acc_smem[_LANE_SUM_V] = jnp.float32(0.0)
        acc_smem[_LANE_SUM_PHI] = jnp.float32(0.0)
        acc_smem[_LANE_TASK_SUM] = jnp.float32(0.0)

    # backbone: f = relu(W1^T x + geometry_bias)        -> (F, TILE_HW) f32
    # bf16 x bf16 matmul with f32 accumulation straight on the MXU.
    f = jnp.dot(w1_ref[...], x_ref[...], preferred_element_type=jnp.float32)
    f = jnp.maximum(f + gb_ref[...], 0.0)

    # task head + aux (domain discriminator) head share one matmul:
    # wh = [w2 | wa]^T -> rows [0:K) are task logits, row K is the aux logit.
    wh = wh_ref[...].astype(jnp.float32)                 # (K+1, F)
    logits = jnp.dot(wh, f, preferred_element_type=jnp.float32) + bh_ref[...]
    k_task = wh_ref.shape[0] - 1
    task_logits = logits[:k_task, :]                     # (K, TILE_HW)
    v = logits[k_task:, :]                               # (1, TILE_HW)

    # taskhead output = sigmoid probabilities, stored lane-dense.
    p = jax.nn.sigmoid(task_logits)
    p_ref[...] = p.astype(p_ref.dtype)

    # fDAL (pearson) reductions on the domain logits.  GRL forward = identity.
    acc_smem[_LANE_SUM_V] += jnp.sum(v)
    acc_smem[_LANE_SUM_PHI] += jnp.sum(0.25 * v * v + v)

    # task-loss term (reference `taskloss is None` branch) only exists for
    # source rows; skip both log() transcendentals for target/aug rows.
    @pl.when(b < num_src)
    def _():
        yv = y_ref[...].astype(jnp.float32)
        task_term = (BETA * yv * jnp.log(p + 1e-05)
                     + (1.0 - yv) * jnp.log(1.00001 - p))
        acc_smem[_LANE_TASK_SUM] += jnp.sum(task_term)

    # one lane-placement + (8,128) store per batch element (not per tile).
    @pl.when(r == pl.num_programs(1) - 1)
    def _():
        row = lax.broadcasted_iota(jnp.int32, (8, 128), 0)
        col = lax.broadcasted_iota(jnp.int32, (8, 128), 1)
        tile = jnp.zeros((8, 128), jnp.float32)
        tile = jnp.where((row == 0) & (col == _LANE_SUM_V),
                         acc_smem[_LANE_SUM_V], tile)
        tile = jnp.where((row == 0) & (col == _LANE_SUM_PHI),
                         acc_smem[_LANE_SUM_PHI], tile)
        tile = jnp.where((row == 0) & (col == _LANE_TASK_SUM),
                         acc_smem[_LANE_TASK_SUM], tile)
        sums_ref[...] = tile


def _pick_hw_tile(hw):
    for t in (2048, 1024, 512, 256, 128):
        if hw % t == 0:
            return t
    return hw  # whole-HW block is always a legal fallback


def fused_forward(imgs_all, gbias, y_src, w1_t, wh_t, bh):
    b_all, c, hw = imgs_all.shape
    num_src = y_src.shape[0]
    f_dim = w1_t.shape[0]
    k_all = wh_t.shape[0]       # K + 1 (task outputs + aux output)
    k = k_all - 1
    tr = _pick_hw_tile(hw)
    n_r = hw // tr

    kernel = functools.partial(fused_fdal_kernel, num_src=num_src)

    # labels only exist for source rows; clamp the batch index for the rest
    # (those rows never read y inside the kernel).
    def y_map(b, r):
        return (jnp.minimum(b, num_src - 1), 0, r)

    p_out, sums = pl.pallas_call(
        kernel,
        out_shape=(jax.ShapeDtypeStruct((b_all, k, hw), jnp.float32),
                   jax.ShapeDtypeStruct((b_all, 8, 128), jnp.float32)),
        grid_spec=pltpu.PrefetchScalarGridSpec(
            num_scalar_prefetch=0,
            grid=(b_all, n_r),
            in_specs=[
                pl.BlockSpec((None, c, tr), lambda b, r: (b, 0, r)),      # x
                pl.BlockSpec((None, f_dim, 1), lambda b, r: (b, 0, 0)),   # gbias
                pl.BlockSpec((None, k, tr), y_map),                       # y (src only)
                pl.BlockSpec((f_dim, c), lambda b, r: (0, 0)),            # w1^T
                pl.BlockSpec((k_all, f_dim), lambda b, r: (0, 0)),        # [w2|wa]^T
                pl.BlockSpec((k_all, 1), lambda b, r: (0, 0)),            # head bias
            ],
            out_specs=[
                pl.BlockSpec((None, k, tr), lambda b, r: (b, 0, r)),      # p
                pl.BlockSpec((None, 8, 128), lambda b, r: (b, 0, 0)),     # sums
            ],
            scratch_shapes=[pltpu.SMEM((3,), jnp.float32)]),
        compiler_params=pltpu.CompilerParams(
            dimension_semantics=("parallel", "arbitrary"),
            vmem_limit_bytes=32 * 1024 * 1024),  # fits v7x; raise on v5e/v6e
    )(imgs_all, gbias, y_src, w1_t, wh_t, bh)
    return p_out, sums


# ---------------------------------------------------------------------------
# fDALLearner.forward (glue)
# ---------------------------------------------------------------------------
def fdal_learner_forward(x, y, params):
    (imgs_s, rots_s, trans_s, intrins_s, post_rots_s, post_trans_s) = x[0]
    (imgs_t, rots_t, trans_t, intrins_t, post_rots_t, post_trans_t,
     aug_imgs) = x[1]
    src_size = imgs_s.shape[0]
    trg_size = imgs_t.shape[0]
    aug_size = aug_imgs.shape[0]
    b_all = src_size + trg_size + aug_size
    y_s = y  # unsupervised adaptation: y is source labels only

    c, h, w = imgs_s.shape[1], imgs_s.shape[2], imgs_s.shape[3]
    hw = h * w
    f_dim = params["w1"].shape[1]
    k = params["w2"].shape[1]

    def flat_geom(rots, trans, intrins, post_rots, post_trans):
        n = rots.shape[0]
        return jnp.concatenate(
            [rots.reshape(n, -1), trans.reshape(n, -1),
             intrins.reshape(n, -1), post_rots.reshape(n, -1),
             post_trans.reshape(n, -1)], axis=1).astype(jnp.float32)

    geom_s = flat_geom(rots_s, trans_s, intrins_s, post_rots_s, post_trans_s)
    geom_t = flat_geom(rots_t, trans_t, intrins_t, post_rots_t, post_trans_t)
    geom_all = jnp.concatenate([geom_s, geom_t, geom_t], axis=0)

    # hoisted geometry bias: tiny (B, F) matmul stays in plain XLA.
    gbias = (geom_all @ params["wg"] + params["b1"]).astype(jnp.float32)
    gbias = gbias.reshape(b_all, f_dim, 1)

    # rows [0:src) source, [src:src+trg) target, [src+trg:) augmented target.
    # NCHW -> (B, C, HW) is a pure reshape (no transpose) in this layout.
    imgs_all = jnp.concatenate([imgs_s, imgs_t, aug_imgs], axis=0)
    imgs_all = imgs_all.reshape(b_all, c, hw).astype(jnp.bfloat16)

    # source labels only, bf16 (0/1 values are exact in bf16).
    y_src = y_s.reshape(src_size, k, hw).astype(jnp.bfloat16)

    # transposed weights; taskhead and aux head fused into one (K+1, F) head.
    w1_t = params["w1"].T.astype(jnp.bfloat16)                       # (F, C)
    wh_t = jnp.concatenate([params["w2"], params["wa"]],
                           axis=1).T.astype(jnp.bfloat16)            # (K+1, F)
    bh = jnp.concatenate([params["b2"], params["ba"]],
                         axis=1).T.astype(jnp.float32)               # (K+1, 1)

    p_all, sums = fused_forward(imgs_all, gbias, y_src, w1_t, wh_t, bh)

    outputs_src = p_all[:src_size]                       # (B_s, K, HW)
    outputs_tgt = p_all[src_size:src_size + trg_size]    # (B_t, K, HW)

    sum_v = sums[:, 0, _LANE_SUM_V]
    sum_phi = sums[:, 0, _LANE_SUM_PHI]
    task_sum = sums[:, 0, _LANE_TASK_SUM]

    # task loss (self.taskloss == None branch of the reference; not negated).
    task_loss = jnp.sum(task_sum[:src_size]) / (src_size * hw * k)

    # TODO(synk): the reference also computes a pseudo_loss from target/aug
    # predictions and immediately discards it; omitted here as dead code.

    fdal_loss = 0.0
    lhat_src = jnp.float32(0.0)
    lhat_trg = jnp.float32(0.0)
    if REG_COEF > 0.0:
        n_per = hw  # aux head emits one logit per pixel
        lhat_src = jnp.sum(sum_v[:src_size]) / (src_size * n_per)
        lhat_trg = jnp.sum(sum_v[src_size:src_size + trg_size]) / (
            trg_size * n_per)
        mean_phi_t = jnp.sum(sum_phi[src_size:src_size + trg_size]) / (
            trg_size * n_per)
        dst = GAMMA * lhat_src - mean_phi_t              # pearson divergence
        fdal_loss = REG_COEF * (-MULTIPLIER * dst)
        total_loss = task_loss + fdal_loss
    else:
        total_loss = task_loss

    return total_loss, {
        "pred_s": outputs_src.reshape(src_size, k, h, w),
        "pred_t": outputs_tgt.reshape(trg_size, k, h, w),
        "taskloss": task_loss,
        "fdal_loss": fdal_loss,
        "fdal_src": lhat_src,
        "fdal_trg": lhat_trg,
    }


def init_params(key, C, G, F, K):
    ks = jax.random.split(key, 4)
    return {
        "w1": 0.1 * jax.random.normal(ks[0], (C, F), jnp.float32),
        "b1": jnp.zeros((1, F), jnp.float32),
        "wg": 0.05 * jax.random.normal(ks[1], (G, F), jnp.float32),
        "w2": 0.1 * jax.random.normal(ks[2], (F, K), jnp.float32),
        "b2": jnp.zeros((1, K), jnp.float32),
        "wa": 0.1 * jax.random.normal(ks[3], (F, 1), jnp.float32),
        "ba": jnp.zeros((1, 1), jnp.float32),
    }


if __name__ == "__main__":
    key = jax.random.PRNGKey(0)
    B_s, B_t, C, H, W = 2, 2, 4, 16, 16
    F, K = 32, 1
    G = 9 + 3 + 9 + 9 + 3  # rots, trans, intrins, post_rots, post_trans (flat)

    keys = jax.random.split(key, 16)
    imgs_s = jax.random.normal(keys[0], (B_s, C, H, W), jnp.float32)
    imgs_t = jax.random.normal(keys[1], (B_t, C, H, W), jnp.float32)
    aug_imgs = jax.random.normal(keys[2], (B_t, C, H, W), jnp.float32)
    rots_s = jax.random.normal(keys[3], (B_s, 3, 3), jnp.float32)
    trans_s = jax.random.normal(keys[4], (B_s, 3), jnp.float32)
    intrins_s = jax.random.normal(keys[5], (B_s, 3, 3), jnp.float32)
    post_rots_s = jax.random.normal(keys[6], (B_s, 3, 3), jnp.float32)
    post_trans_s = jax.random.normal(keys[7], (B_s, 3), jnp.float32)
    rots_t = jax.random.normal(keys[8], (B_t, 3, 3), jnp.float32)
    trans_t = jax.random.normal(keys[9], (B_t, 3), jnp.float32)
    intrins_t = jax.random.normal(keys[10], (B_t, 3, 3), jnp.float32)
    post_rots_t = jax.random.normal(keys[11], (B_t, 3, 3), jnp.float32)
    post_trans_t = jax.random.normal(keys[12], (B_t, 3), jnp.float32)
    y_src = (jax.random.uniform(keys[13], (B_s, K, H, W)) > 0.5).astype(
        jnp.float32)

    params = init_params(keys[14], C, G, F, K)

    x = ((imgs_s, rots_s, trans_s, intrins_s, post_rots_s, post_trans_s),
         (imgs_t, rots_t, trans_t, intrins_t, post_rots_t, post_trans_t,
          aug_imgs))

    fwd = jax.jit(functools.partial(fdal_learner_forward, params=params))
    total_loss, outputs = fwd(x, y_src)
    jax.block_until_ready(total_loss)
    jax.block_until_ready(outputs)
    print("KERNEL_OK")
</pallas_src>

<mosaic_0001>
module attributes {stable_mosaic.version = 11 : i64} {
  func.func @fused_fdal_kernel(%arg0: i32, %arg1: i32, %arg2: memref<1x4x256xbf16, #tpu.memory_space<vmem>>, %arg3: memref<1x32x1xf32, #tpu.memory_space<vmem>>, %arg4: memref<1x1x256xbf16, #tpu.memory_space<vmem>>, %arg5: memref<32x4xbf16, #tpu.memory_space<vmem>>, %arg6: memref<2x32xbf16, #tpu.memory_space<vmem>>, %arg7: memref<2x1xf32, #tpu.memory_space<vmem>>, %arg8: memref<1x1x256xf32, #tpu.memory_space<vmem>>, %arg9: memref<1x8x128xf32, #tpu.memory_space<vmem>>, %arg10: memref<3xf32, #tpu.memory_space<smem>>) attributes {dimension_semantics = [#tpu.dimension_semantics<parallel>, #tpu.dimension_semantics<arbitrary>], iteration_bounds = array<i64: 6, 1>, scalar_prefetch = 0 : i64, scratch_operands = 1 : i64, tpu.core_type = #tpu.core_type<tc>, window_params = [{transform_indices = @transform_0, window_bounds = array<i64: 1, 4, 256>}, {transform_indices = @transform_1, window_bounds = array<i64: 1, 32, 1>}, {transform_indices = @transform_2, window_bounds = array<i64: 1, 1, 256>}, {pipeline_mode = #tpu.pipeline_mode<synchronous>, transform_indices = @transform_3, window_bounds = array<i64: 32, 4>}, {pipeline_mode = #tpu.pipeline_mode<synchronous>, transform_indices = @transform_4, window_bounds = array<i64: 2, 32>}, {pipeline_mode = #tpu.pipeline_mode<synchronous>, transform_indices = @transform_5, window_bounds = array<i64: 2, 1>}, {transform_indices = @transform_6, window_bounds = array<i64: 1, 1, 256>}, {transform_indices = @transform_7, window_bounds = array<i64: 1, 8, 128>}]} {
    %c0_i32 = arith.constant 0 : i32
    %0 = arith.cmpi eq, %arg1, %c0_i32 : i32
    %1 = arith.extui %0 : i1 to i32
    %c0_i32_0 = arith.constant 0 : i32
    %2 = arith.cmpi ne, %1, %c0_i32_0 : i32
    scf.if %2 {
      %cst_27 = arith.constant 0.000000e+00 : f32
      %c0_28 = arith.constant 0 : index
      %53 = memref.load %arg10[%c0_28] : memref<3xf32, #tpu.memory_space<smem>>
      memref.store %cst_27, %arg10[%c0_28] : memref<3xf32, #tpu.memory_space<smem>>
      %cst_29 = arith.constant 0.000000e+00 : f32
      %c1_30 = arith.constant 1 : index
      %54 = memref.load %arg10[%c1_30] : memref<3xf32, #tpu.memory_space<smem>>
      memref.store %cst_29, %arg10[%c1_30] : memref<3xf32, #tpu.memory_space<smem>>
      %cst_31 = arith.constant 0.000000e+00 : f32
      %c2 = arith.constant 2 : index
      %55 = memref.load %arg10[%c2] : memref<3xf32, #tpu.memory_space<smem>>
      memref.store %cst_31, %arg10[%c2] : memref<3xf32, #tpu.memory_space<smem>>
    } else {
    }
    %c0 = arith.constant 0 : index
    %c0_1 = arith.constant 0 : index
    %3 = vector.load %arg5[%c0, %c0_1] : memref<32x4xbf16, #tpu.memory_space<vmem>>, vector<32x4xbf16>
    %c0_2 = arith.constant 0 : index
    %c0_3 = arith.constant 0 : index
    %c0_4 = arith.constant 0 : index
    %4 = vector.load %arg2[%c0_2, %c0_3, %c0_4] : memref<1x4x256xbf16, #tpu.memory_space<vmem>>, vector<1x4x256xbf16>
    %5 = vector.shape_cast %4 : vector<1x4x256xbf16> to vector<4x256xbf16>
    %cst = arith.constant dense<0.000000e+00> : vector<32x256xf32>
    %6 = tpu.matmul %3, %5, %cst {dimension_numbers = #tpu.dot_dimension_numbers<[1], [0], [0], [1], [0, 0, 1, 1], [], []>} : vector<32x4xbf16>, vector<4x256xbf16>, vector<32x256xf32> -> vector<32x256xf32>
    %c0_5 = arith.constant 0 : index
    %c0_6 = arith.constant 0 : index
    %c0_7 = arith.constant 0 : index
    %7 = vector.load %arg3[%c0_5, %c0_6, %c0_7] : memref<1x32x1xf32, #tpu.memory_space<vmem>>, vector<1x32x1xf32>
    %8 = vector.shape_cast %7 : vector<1x32x1xf32> to vector<32x1xf32>
    %9 = vector.broadcast %8 : vector<32x1xf32> to vector<32x256xf32>
    %10 = arith.addf %6, %9 : vector<32x256xf32>
    %cst_8 = arith.constant 0.000000e+00 : f32
    %11 = vector.broadcast %cst_8 : f32 to vector<32x256xf32>
    %12 = arith.maximumf %10, %11 : vector<32x256xf32>
    %c0_9 = arith.constant 0 : index
    %c0_10 = arith.constant 0 : index
    %13 = vector.load %arg6[%c0_9, %c0_10] : memref<2x32xbf16, #tpu.memory_space<vmem>>, vector<2x32xbf16>
    %14 = arith.extf %13 : vector<2x32xbf16> to vector<2x32xf32>
    %cst_11 = arith.constant dense<0.000000e+00> : vector<2x256xf32>
    %15 = tpu.matmul %14, %12, %cst_11 {dimension_numbers = #tpu.dot_dimension_numbers<[1], [0], [0], [1], [0, 0, 1, 1], [], []>} : vector<2x32xf32>, vector<32x256xf32>, vector<2x256xf32> -> vector<2x256xf32>
    %c0_12 = arith.constant 0 : index
    %c0_13 = arith.constant 0 : index
    %16 = vector.load %arg7[%c0_12, %c0_13] : memref<2x1xf32, #tpu.memory_space<vmem>>, vector<2x1xf32>
    %17 = vector.broadcast %16 : vector<2x1xf32> to vector<2x256xf32>
    %18 = arith.addf %15, %17 : vector<2x256xf32>
    %19 = vector.extract_strided_slice %18 {offsets = [0, 0], sizes = [1, 256], strides = [1, 1]} : vector<2x256xf32> to vector<1x256xf32>
    %20 = vector.extract_strided_slice %18 {offsets = [1, 0], sizes = [1, 256], strides = [1, 1]} : vector<2x256xf32> to vector<1x256xf32>
    %21 = arith.negf %19 : vector<1x256xf32>
    %22 = math.exp %21 : vector<1x256xf32>
    %cst_14 = arith.constant 1.000000e+00 : f32
    %23 = vector.broadcast %cst_14 : f32 to vector<1x256xf32>
    %24 = arith.addf %23, %22 : vector<1x256xf32>
    %25 = arith.divf %23, %24 : vector<1x256xf32>
    %c0_15 = arith.constant 0 : index
    %c0_16 = arith.constant 0 : index
    %c0_17 = arith.constant 0 : index
    %26 = vector.load %arg8[%c0_15, %c0_16, %c0_17] : memref<1x1x256xf32, #tpu.memory_space<vmem>>, vector<1x1x256xf32>
    %27 = vector.shape_cast %26 : vector<1x1x256xf32> to vector<1x256xf32>
    %28 = vector.shape_cast %25 : vector<1x256xf32> to vector<1x1x256xf32>
    tpu.vector_store %arg8[%c0_15, %c0_16, %c0_17], %28 {strides = array<i32>} : memref<1x1x256xf32, #tpu.memory_space<vmem>>, vector<1x1x256xf32>,
    %c0_18 = arith.constant 0 : index
    %29 = memref.load %arg10[%c0_18] : memref<3xf32, #tpu.memory_space<smem>>
    %30 = vector.shape_cast %20 : vector<1x256xf32> to vector<1x1x256xf32>
    %cst_19 = arith.constant dense<0.000000e+00> : vector<1xf32>
    %31 = vector.multi_reduction <add>, %30, %cst_19 [1, 2] : vector<1x1x256xf32> to vector<1xf32>
    %32 = vector.shape_cast %31 : vector<1xf32> to vector<1x1x1xf32>
    %33 = vector.extract %32[0, 0, 0] : f32 from vector<1x1x1xf32>
    %34 = arith.addf %29, %33 : f32
    %c0_20 = arith.constant 0 : index
    %35 = memref.load %arg10[%c0_20] : memref<3xf32, #tpu.memory_space<smem>>
    memref.store %34, %arg10[%c0_20] : memref<3xf32, #tpu.memory_space<smem>>
    %c1 = arith.constant 1 : index
    %36 = memref.load %arg10[%c1] : memref<3xf32, #tpu.memory_space<smem>>
    %cst_21 = arith.constant 2.500000e-01 : f32
    %37 = vector.broadcast %cst_21 : f32 to vector<1x256xf32>
    %38 = arith.mulf %37, %20 : vector<1x256xf32>
    %39 = arith.mulf %38, %20 : vector<1x256xf32>
    %40 = arith.addf %39, %20 : vector<1x256xf32>
    %41 = vector.shape_cast %40 : vector<1x256xf32> to vector<1x1x256xf32>
    %cst_22 = arith.constant dense<0.000000e+00> : vector<1xf32>
    %42 = vector.multi_reduction <add>, %41, %cst_22 [1, 2] : vector<1x1x256xf32> to vector<1xf32>
    %43 = vector.shape_cast %42 : vector<1xf32> to vector<1x1x1xf32>
    %44 = vector.extract %43[0, 0, 0] : f32 from vector<1x1x1xf32>
    %45 = arith.addf %36, %44 : f32
    %c1_23 = arith.constant 1 : index
    %46 = memref.load %arg10[%c1_23] : memref<3xf32, #tpu.memory_space<smem>>
    memref.store %45, %arg10[%c1_23] : memref<3xf32, #tpu.memory_space<smem>>
    %c2_i32 = arith.constant 2 : i32
    %47 = arith.cmpi slt, %arg0, %c2_i32 : i32
    %48 = arith.extui %47 : i1 to i32
    %c0_i32_24 = arith.constant 0 : i32
    %49 = arith.cmpi ne, %48, %c0_i32_24 : i32
    scf.if %49 {
      %c0_27 = arith.constant 0 : index
      %c0_28 = arith.constant 0 : index
      %c0_29 = arith.constant 0 : index
      %53 = vector.load %arg4[%c0_27, %c0_28, %c0_29] : memref<1x1x256xbf16, #tpu.memory_space<vmem>>, vector<1x1x256xbf16>
      %54 = vector.shape_cast %53 : vector<1x1x256xbf16> to vector<1x256xbf16>
      %55 = arith.extf %54 : vector<1x256xbf16> to vector<1x256xf32>
      %cst_30 = arith.constant 1.000000e+00 : f32
      %56 = vector.broadcast %cst_30 : f32 to vector<1x256xf32>
      %57 = arith.mulf %56, %55 : vector<1x256xf32>
      %cst_31 = arith.constant 9.99999974E-6 : f32
      %58 = vector.broadcast %cst_31 : f32 to vector<1x256xf32>
      %59 = arith.addf %25, %58 : vector<1x256xf32>
      %60 = math.log %59 : vector<1x256xf32>
      %61 = arith.mulf %57, %60 : vector<1x256xf32>
      %cst_32 = arith.constant 1.000000e+00 : f32
      %62 = vector.broadcast %cst_32 : f32 to vector<1x256xf32>
      %63 = arith.subf %62, %55 : vector<1x256xf32>
      %cst_33 = arith.constant 1.000010e+00 : f32
      %64 = vector.broadcast %cst_33 : f32 to vector<1x256xf32>
      %65 = arith.subf %64, %25 : vector<1x256xf32>
      %66 = math.log %65 : vector<1x256xf32>
      %67 = arith.mulf %63, %66 : vector<1x256xf32>
      %68 = arith.addf %61, %67 : vector<1x256xf32>
      %c2 = arith.constant 2 : index
      %69 = memref.load %arg10[%c2] : memref<3xf32, #tpu.memory_space<smem>>
      %70 = vector.shape_cast %68 : vector<1x256xf32> to vector<1x1x256xf32>
      %cst_34 = arith.constant dense<0.000000e+00> : vector<1xf32>
      %71 = vector.multi_reduction <add>, %70, %cst_34 [1, 2] : vector<1x1x256xf32> to vector<1xf32>
      %72 = vector.shape_cast %71 : vector<1xf32> to vector<1x1x1xf32>
      %73 = vector.extract %72[0, 0, 0] : f32 from vector<1x1x1xf32>
      %74 = arith.addf %69, %73 : f32
      %c2_35 = arith.constant 2 : index
      %75 = memref.load %arg10[%c2_35] : memref<3xf32, #tpu.memory_space<smem>>
      memref.store %74, %arg10[%c2_35] : memref<3xf32, #tpu.memory_space<smem>>
    } else {
    }
    %c0_i32_25 = arith.constant 0 : i32
    %50 = arith.cmpi eq, %arg1, %c0_i32_25 : i32
    %51 = arith.extui %50 : i1 to i32
    %c0_i32_26 = arith.constant 0 : i32
    %52 = arith.cmpi ne, %51, %c0_i32_26 : i32
    scf.if %52 {
      %53 = tpu.iota {dimensions = array<i32: 0>} : vector<8x128xi32>
      %54 = tpu.iota {dimensions = array<i32: 1>} : vector<8x128xi32>
      %cst_27 = arith.constant 0.000000e+00 : f32
      %55 = vector.broadcast %cst_27 : f32 to vector<8x128xf32>
      %c0_i32_28 = arith.constant 0 : i32
      %56 = vector.broadcast %c0_i32_28 : i32 to vector<8x128xi32>
      %57 = arith.cmpi eq, %53, %56 : vector<8x128xi32>
      %c0_i32_29 = arith.constant 0 : i32
      %58 = vector.broadcast %c0_i32_29 : i32 to vector<8x128xi32>
      %59 = arith.cmpi eq, %54, %58 : vector<8x128xi32>
      %60 = arith.andi %57, %59 : vector<8x128xi1>
      %c0_30 = arith.constant 0 : index
      %61 = memref.load %arg10[%c0_30] : memref<3xf32, #tpu.memory_space<smem>>
      %62 = vector.broadcast %61 : f32 to vector<8x128xf32>
      %63 = arith.select %60, %62, %55 : vector<8x128xi1>, vector<8x128xf32>
      %c0_i32_31 = arith.constant 0 : i32
      %64 = vector.broadcast %c0_i32_31 : i32 to vector<8x128xi32>
      %65 = arith.cmpi eq, %53, %64 : vector<8x128xi32>
      %c1_i32 = arith.constant 1 : i32
      %66 = vector.broadcast %c1_i32 : i32 to vector<8x128xi32>
      %67 = arith.cmpi eq, %54, %66 : vector<8x128xi32>
      %68 = arith.andi %65, %67 : vector<8x128xi1>
      %c1_32 = arith.constant 1 : index
      %69 = memref.load %arg10[%c1_32] : memref<3xf32, #tpu.memory_space<smem>>
      %70 = vector.broadcast %69 : f32 to vector<8x128xf32>
      %71 = arith.select %68, %70, %63 : vector<8x128xi1>, vector<8x128xf32>
      %c0_i32_33 = arith.constant 0 : i32
      %72 = vector.broadcast %c0_i32_33 : i32 to vector<8x128xi32>
      %73 = arith.cmpi eq, %53, %72 : vector<8x128xi32>
      %c2_i32_34 = arith.constant 2 : i32
      %74 = vector.broadcast %c2_i32_34 : i32 to vector<8x128xi32>
      %75 = arith.cmpi eq, %54, %74 : vector<8x128xi32>
      %76 = arith.andi %73, %75 : vector<8x128xi1>
      %c2 = arith.constant 2 : index
      %77 = memref.load %arg10[%c2] : memref<3xf32, #tpu.memory_space<smem>>
      %78 = vector.broadcast %77 : f32 to vector<8x128xf32>
      %79 = arith.select %76, %78, %71 : vector<8x128xi1>, vector<8x128xf32>
      %c0_35 = arith.constant 0 : index
      %c0_36 = arith.constant 0 : index
      %c0_37 = arith.constant 0 : index
      %80 = vector.load %arg9[%c0_35, %c0_36, %c0_37] : memref<1x8x128xf32, #tpu.memory_space<vmem>>, vector<1x8x128xf32>
      %81 = vector.shape_cast %80 : vector<1x8x128xf32> to vector<8x128xf32>
      %82 = vector.shape_cast %79 : vector<8x128xf32> to vector<1x8x128xf32>
      tpu.vector_store %arg9[%c0_35, %c0_36, %c0_37], %82 {strides = array<i32>} : memref<1x8x128xf32, #tpu.memory_space<vmem>>, vector<1x8x128xf32>,
    } else {
    }
    return
  }
  func.func @transform_0(%arg0: i32, %arg1: i32) -> (i32, i32, i32) {
    %c0_i32 = arith.constant 0 : i32
    %c0_i32_0 = arith.constant 0 : i32
    return %arg0, %c0_i32, %arg1 : i32, i32, i32
  }
  func.func @transform_1(%arg0: i32, %arg1: i32) -> (i32, i32, i32) {
    %c0_i32 = arith.constant 0 : i32
    %c0_i32_0 = arith.constant 0 : i32
    %c0_i32_1 = arith.constant 0 : i32
    return %arg0, %c0_i32, %c0_i32_0 : i32, i32, i32
  }
  func.func @transform_2(%arg0: i32, %arg1: i32) -> (i32, i32, i32) {
    %c1_i32 = arith.constant 1 : i32
    %0 = arith.minsi %arg0, %c1_i32 : i32
    %c0_i32 = arith.constant 0 : i32
    %c0_i32_0 = arith.constant 0 : i32
    return %0, %c0_i32, %arg1 : i32, i32, i32
  }
  func.func @transform_3(%arg0: i32, %arg1: i32) -> (i32, i32) {
    %c0_i32 = arith.constant 0 : i32
    %c0_i32_0 = arith.constant 0 : i32
    %c0_i32_1 = arith.constant 0 : i32
    return %c0_i32, %c0_i32_0 : i32, i32
  }
  func.func @transform_4(%arg0: i32, %arg1: i32) -> (i32, i32) {
    %c0_i32 = arith.constant 0 : i32
    %c0_i32_0 = arith.constant 0 : i32
    %c0_i32_1 = arith.constant 0 : i32
    return %c0_i32, %c0_i32_0 : i32, i32
  }
  func.func @transform_5(%arg0: i32, %arg1: i32) -> (i32, i32) {
    %c0_i32 = arith.constant 0 : i32
    %c0_i32_0 = arith.constant 0 : i32
    %c0_i32_1 = arith.constant 0 : i32
    return %c0_i32, %c0_i32_0 : i32, i32
  }
  func.func @transform_6(%arg0: i32, %arg1: i32) -> (i32, i32, i32) {
    %c0_i32 = arith.constant 0 : i32
    %c0_i32_0 = arith.constant 0 : i32
    return %arg0, %c0_i32, %arg1 : i32, i32, i32
  }
  func.func @transform_7(%arg0: i32, %arg1: i32) -> (i32, i32, i32) {
    %c0_i32 = arith.constant 0 : i32
    %c0_i32_0 = arith.constant 0 : i32
    %c0_i32_1 = arith.constant 0 : i32
    return %arg0, %c0_i32, %c0_i32_0 : i32, i32, i32
  }
}

</mosaic_0001>

<bundles_post_ra>
// kernel: fdal_learner_forward.1
= control target key start
LH: loop header
LB: loop body
LE: loop exit
PB: predicated region body
PF: predicated region fallthrough
CT: control target
= control target key end

     0   :  { %s1098_s24 = smov 0   ;;  %s1100_s25 = smov 0   ;;  %s1187_s0 = inlined_call_operand.vmem [shape: bf16[6,4,256], index: 0, kind: input, shape index: {}]   ;;  %s1188_s1 = inlined_call_operand.vmem [shape: f32[6,32,1], index: 1, kind: input, shape index: {}]   ;;  %s1189_s2 = inlined_call_operand.vmem [shape: bf16[2,1,256], index: 2, kind: input, shape index: {}]   ;;  %s1190_s3 = inlined_call_operand.vmem [shape: bf16[32,4], index: 3, kind: input, shape index: {}]   ;;  %s1191_s4 = inlined_call_operand.vmem [shape: bf16[2,32], index: 4, kind: input, shape index: {}]   ;;  %s1192_s5 = inlined_call_operand.vmem [shape: f32[2,1], index: 5, kind: input, shape index: {}]   ;;  %s1193_s6 = inlined_call_operand.vmem [shape: f32[6,1,256], index: 6, kind: output, shape index: {0}]   ;;  %s1194_s7 = inlined_call_operand.vmem [shape: f32[6,8,128], index: 7, kind: output, shape index: {1}]  }
   0x1   :  { %s1102_s26 = smov 0  }
   0x2 LB: > { %s30_s27 = sadd.s32 1, %s1047_s25  ;;  %p935_p0 = scmp.ge.s32.totalorder %s1051_s26, 1  ;;  %s1051_s26 = sphi %s1102_s26, %s18_s26   ;;  %s1047_s25 = sphi %s1100_s25, %s1196_s25   ;;  %s1043_s24 = sphi %s1098_s24, %s1195_s24  }
   0x3   : > { %p32_p1 = scmp.ge.s32.totalorder %s30_s27, 6  ;;  %p295_p2 = scmp.lt.s32.totalorder %s1051_s26, 7 }
   0x5   : > { %s1198_s27 = smov (%p32_p1, %s30_s27), 0  ;;  %p296_p3 = pnand %p935_p0, %p295_p2 }
   0x6   : > { %p354_p4 = scmp.lt.s32.totalorder (!%p296_p3), %s1043_s24, 5  ;;  %p368_p5 = scmp.lt.s32.totalorder (!%p296_p3), %s1043_s24, 1  ;;  %v1053_v0 = vmov (!%p296_p3), 0   ;;  %vm460_vm0 = vcmask (!%p296_p3), 1041408   ;;  %v1011_v4 = vld [vmem:[%s1190_s3] sm:$0xff] (!%p296_p3)   ;;  %v1012_v5 = vld [vmem:[%s1190_s3 + $0x8] sm:$0xff] (!%p296_p3)  }
   0x7   : > { %299 = sbr.rel (%p296_p3) target bundleno = 743 (0x2e7), region = 44  ;;  %499 = vmatprep.mubr.bf16.mxu0 (!%p296_p3), %v1053_v0  ;;  %509 = vmatprep.mubr.bf16.mxu1 (!%p296_p3), %v1053_v0  ;;  %vm453_vm1 = vcmask (!%p296_p3), 31744   ;;  %v530_v10 = vld [vmem:[%s1192_s5] sm:$0x3] (!%p296_p3)  ;;  %v1054_v11 = vmov (!%p296_p3), 0.0   ;;  %vm536_vm2 = vcmask (!%p296_p3), 261120  }
   0x8   : > { %1009 = vset.pattern.permute.xlu0 (!%p296_p3), %v1053_v0  ;;  %1010 = vset.pattern.permute.xlu1 (!%p296_p3), %v1053_v0  ;;  %v528_v44 = vld [vmem:[%s1191_s4] sm:$0x1] (!%p296_p3)  ;;  %vm653_vm3 = vcmask (!%p296_p3), 1040384   ;;  %s1056_s18 = smov (!%p296_p3), 0.0   ;;  %p956_p6 = scmp.ge.s32.totalorder (!%p296_p3), %s1043_s24, 2 }
   0x9   : > { %v529_v45 = vunpack.c.l.bf16 (!%p296_p3), %v528_v44  ;;  %404 = sst [smem:[#allocation2 + $0x2]] (!%p296_p3), %s1056_s18 }
   0xe   : > { %s1121_s28 = scalar_select %p354_p4, %s1043_s24, 5 }
   0xf   : > { %s369_s29 = scalar_select %p368_p5, %s1043_s24, 1 }
  0x10   : > { %s962_s30 = sshll.u32 %s1121_s28, 2  ;;  %s945_s11 = sshll.u32 %s1121_s28, 3 }
  0x11   : > { %s361_s10 = scalar_lea.vmem %s1187_s0, %s962_s30  ;;  %s1200_s29 = smov (!%p368_p5, %s369_s29), 1 }
  0x12   : > { %v948_v1 = vld.sshfl [vmem:[%s361_s10] sm:$0x33 pattern:$0x76325410]  ;;  %s963_s12 = sshll.u32 %s1121_s28, 5  ;;  %s943_s13 = sshll.u32 %s1200_s29, 1 }
  0x13   : > { %v452_v2 = vcombine.high %v948_v1, %v948_v1  ;;  %v462_v3 = vsel %vm460_vm0, %v948_v1, 0  ;;  %s1133_s16 = scalar_lea.vmem %s1194_s7, %s945_s11  ;;  %s1138_s19 = scalar_lea.vmem %s1189_s2, %s943_s13 }
  0x14   : > { %s367_s8 = scalar_lea.vmem %s1188_s1, %s963_s12  ;;  %s944_s13 = sshll.u32 %s1121_s28, 1 }
  0x15   : > { %949 = vmatprep.subr.msk.bf16.mxu0 %vm460_vm0, %v452_v2  ;;  %972 = vmatprep.subr.msk.bf16.mxu1 %vm460_vm0, %v452_v2  ;;  %v410_v6 = vld [vmem:[%s367_s8] sm:$0xff]  ;;  %v412_v7 = vld [vmem:[%s367_s8 + $0x10] sm:$0xff]  ;;  %v411_v8 = vld [vmem:[%s367_s8 + $0x8] sm:$0xff]  ;;  %s388_s17 = scalar_lea.vmem %s1193_s6, %s944_s13  ;;  %s957_s24 = sld [smem:[#allocation2 + $0x2]] (!%p956_p6) }
  0x16   : > { %468 = vmatpush1.bf16.msra.mxu0 %v462_v3  ;;  %973 = vmatpush1.bf16.msra.mxu1 %v462_v3  ;;  %v413_v9 = vld [vmem:[%s367_s8 + $0x18] sm:$0xff] }
  0x17   : > { %416 = vperm.xlu0 %1009, %v410_v6   ;;  %426 = vperm.xlu1 %1010, %v412_v7  }
  0x19   : > { %950 = vmatmul.mubr.msk.bf16.vlgmr.msra.gmra.mrb[0].mxu0 %vm453_vm1, %v1011_v4  ;;  %951 = vmatmul.mubr.msk.bf16.vlgmr.msra.gmra.mrb[0].mxu1 %vm453_vm1, %v1012_v5 }
  0x1a   : > { %604 = vmatprep.mubr.f32.mxu1 %v1054_v11  ;;  %v629_v11 = vlaneseq }
  0x1b   : > { %421 = vperm.xlu0 %1009, %v411_v8   ;;  %431 = vperm.xlu1 %1010, %v413_v9   ;;  %v1055_v9 = vmov 1966171168  }
  0x1c   : > { %vm643_vm4 = vcmp.lt.s32.totalorder %v629_v11, 256 }
  0x1f   : > { %533 = vperm.xlu0 %1009, %v530_v10   ;;  %v627_v10 = vunpack.c.l.s4 %v1055_v9 }
  0x96   : > { %v417_v12 = vpop.permute.xlu0 %416  ;;  %v427_v13 = vpop.permute.xlu1 %426 }
  0x9a   : > { %v422_v14 = vpop.permute.xlu0 %421  ;;  %v432_v15 = vpop.permute.xlu1 %431 }
  0x9e   : > { %v534_v46 = vpop.permute.xlu0 %533 }
  0xec   : > { %v501_v16 = vpop.f32.mrb[0].mxu0  ;;  %v511_v17 = vpop.f32.mrb[0].mxu1 }
  0xed   : > { %v502_v18 = vadd.f32 %v501_v16, %v417_v12  ;;  %v512_v19 = vadd.f32 %v511_v17, %v427_v13  ;;  %v503_v20 = vpop.f32.mrb[1].mxu0  ;;  %v513_v21 = vpop.f32.mrb[1].mxu1 }
  0xee   : > { %v504_v22 = vadd.f32 %v503_v20, %v417_v12  ;;  %v514_v23 = vadd.f32 %v513_v21, %v427_v13  ;;  %v505_v24 = vpop.f32.mrb[2].mxu0  ;;  %v515_v25 = vpop.f32.mrb[2].mxu1  ;;  %v628_v12 = vunpack.c.0.s8 %v627_v10  ;;  %v1160_v13 = vshrl.u32 %v629_v11, 7 }
  0xef   : > { %v524_v26 = vmax.f32 %v512_v19, 0.0  ;;  %v506_v27 = vadd.f32 %v505_v24, %v422_v14  ;;  %v516_v28 = vadd.f32 %v515_v25, %v432_v15  ;;  %v507_v29 = vpop.f32.mrb[3].mxu0  ;;  %v517_v30 = vpop.f32.mrb[3].mxu1  ;;  %v520_v34 = vmax.f32 %v502_v18, 0.0 }
  0xf0   : > { %v525_v31 = vmax.f32 %v514_v23, 0.0  ;;  %v508_v32 = vadd.f32 %v507_v29, %v422_v14  ;;  %v518_v33 = vadd.f32 %v517_v30, %v432_v15  ;;  %v521_v37 = vmax.f32 %v504_v22, 0.0 }
  0xf1   : > { %v522_v35 = vmax.f32 %v506_v27, 0.0  ;;  %v526_v36 = vmax.f32 %v516_v28, 0.0  ;;  %v631_v15 = vsub.s32 %v628_v12, %v1160_v13 }
  0xf2   : > { %v523_v38 = vmax.f32 %v508_v32, 0.0  ;;  %v527_v39 = vmax.f32 %v518_v33, 0.0 }
  0xf3   : > { %v966_v40 = vpack.c.bf16 %v522_v35, %v520_v34  ;;  %v970_v41 = vpack.c.bf16 %v526_v36, %v524_v26 }
  0xf4   : > { %v964_v42 = vpack.c.bf16 %v523_v38, %v521_v37  ;;  %v968_v43 = vpack.c.bf16 %v527_v39, %v525_v31  ;;  %v1057_v38 = vmov (!%p956_p6), 1983009808  }
  0xf5   : > { %v713_v39 = vunpack.c.l.s4 (!%p956_p6), %v1057_v38 }
  0xf6   : > { %965 = vmatprep.subr.bf16.mxu1 %v964_v42 }
  0xf7   : > { %967 = vmatpush1.bf16.msra.mxu1 %v966_v40  ;;  %v714_v40 = vunpack.c.0.s8 (!%p956_p6), %v713_v39 }
  0xf8   : > { %969 = vmatprep.subr.bf16.mxu1 %v968_v43 }
  0xfb   : > { %971 = vmatpush1.bf16.msra.mxu1 %v970_v41  ;;  %v701_v41 = vld [vmem:[%s1138_s19] sm:$0x3] (!%p956_p6) }
  0xfe   : > { %952 = vmatmul.mubr.msk.f32.vlgmr.msra.gmra.mrb[4].mxu1 %vm536_vm2, %v529_v45 }
 0x1d1   : > { %v606_v47 = vpop.f32.mrb[4].mxu1 }
 0x1d2   : > { %v607_v48 = vadd.f32 %v606_v47, %v534_v46  ;;  %v608_v49 = vpop.f32.mrb[5].mxu1 }
 0x1d3   : > { %v609_v50 = vadd.f32 %v608_v49, %v534_v46  ;;  %v702_v46 = vunpack.c.l.bf16 (!%p956_p6), %v701_v41 }
 0x1d4   : > { %v953_v51 = vmul.f32 -1.442695, %v607_v48  ;;  %v649_v52 = vrot.slane %v607_v48, 1  ;;  %v670_v53 = vmul.f32 0.25, %v607_v48 }
 0x1d5   : > { %v954_v54 = vmul.f32 -1.442695, %v609_v50  ;;  %v650_v55 = vrot.slane %v609_v50, 1  ;;  %v671_v56 = vmul.f32 0.25, %v609_v50 }
 0x1d6   : > { %1013 = vpow2.f32 %v953_v51  ;;  %v654_v57 = vsel %vm653_vm3, %v649_v52, 0.0  ;;  %v672_v58 = vmul.f32 %v670_v53, %v607_v48 }
 0x1d7   : > { %1015 = vpow2.f32 %v954_v54  ;;  %v655_v59 = vsel %vm653_vm3, %v650_v55, 0.0  ;;  %v673_v60 = vmul.f32 %v671_v56, %v609_v50  ;;  %v721_v54 = vsub.f32 (!%p956_p6), 1.0, %v702_v46 }
 0x1d8   : > { %v656_v61 = vadd.f32 %v655_v59, %v654_v57  ;;  %v674_v62 = vadd.f32 %v672_v58, %v607_v48  ;;  %v717_v48 = vsub.s32 (!%p956_p6), %v714_v40, %v1160_v13  ;;  %v745_v59 = vsub.s32 (!%p956_p6), 0, %v1160_v13 }
 0x1d9   : > { %v675_v63 = vadd.f32 %v673_v60, %v609_v50  ;;  %v749_v60 = vsub.s32 (!%p956_p6), 2, %v1160_v13 }
 0x1da   : > { %657 = vadd.xlane.f32.xlu1 %v656_v61  ;;  %v678_v0 = vrot.slane %v674_v62, 1 }
 0x1db   : > { %v679_v1 = vrot.slane %v675_v63, 1 }
 0x1dc   : > { %v682_v2 = vsel %vm653_vm3, %v678_v0, 0.0 }
 0x1dd   : > { %v683_v3 = vsel %vm653_vm3, %v679_v1, 0.0 }
 0x1de   : > { %v684_v4 = vadd.f32 %v683_v3, %v682_v2 }
 0x1e0   : > { %v1014_v5 = vpop.eup %1013  ;;  %685 = vadd.xlane.f32.xlu0 %v684_v4 }
 0x1e1   : > { %v1016_v6 = vpop.eup %1015  ;;  %v617_v7 = vadd.f32 1.0, %v1014_v5 }
 0x1e2   : > { %v618_v8 = vadd.f32 1.0, %v1016_v6 }
 0x1e3   : > { %1017 = vrcp.f32 %v617_v7 }
 0x1e4   : > { %1019 = vrcp.f32 %v618_v8 }
 0x1ed   : > { %v1018_v14 = vpop.eup %1017 }
 0x1ee   : > { %v1020_v16 = vpop.eup %1019  ;;  %v703_v34 = vadd.f32 (!%p956_p6), 1e-05, %v1018_v14  ;;  %v722_v36 = vsub.f32 (!%p956_p6), 1.00001, %v1018_v14 }
 0x1ef   : > { %v625_v17 = vcombine.low %v1018_v14, %v1020_v16  ;;  %v704_v35 = vadd.f32 (!%p956_p6), 1e-05, %v1020_v16  ;;  %v723_v37 = vsub.f32 (!%p956_p6), 1.00001, %v1020_v16 }
 0x1f0   : > { %1021 = vlog2.f32 (!%p956_p6), %v703_v34 }
 0x1f1   : > { %v632_v18 = vrot.slane %v625_v17, %v631_v15  ;;  %1023 = vlog2.f32 (!%p956_p6), %v704_v35 }
 0x1f2   : > { %1025 = vlog2.f32 (!%p956_p6), %v722_v36 }
 0x1f3   : > { %v639_v19 = vrot.slane %v632_v18, %v631_v15  ;;  %1027 = vlog2.f32 (!%p956_p6), %v723_v37 }
 0x1f5   : > { %645 = vst.msk [vmem:[%s388_s17] sm:$0x3] %vm643_vm4, %v639_v19 }
 0x1fa   : > { %v1022_v42 = vpop.eup (!%p956_p6), %1021 }
 0x1fb   : > { %v1024_v43 = vpop.eup (!%p956_p6), %1023  ;;  %v706_v44 = vmul.f32 (!%p956_p6), 0.6931472, %v1022_v42 }
 0x1fc   : > { %v1026_v45 = vpop.eup (!%p956_p6), %1025  ;;  %v708_v47 = vmul.f32 (!%p956_p6), 0.6931472, %v1024_v43 }
 0x1fd   : > { %v1028_v49 = vpop.eup (!%p956_p6), %1027  ;;  %v725_v50 = vmul.f32 (!%p956_p6), 0.6931472, %v1026_v45 }
 0x1fe   : > { %v711_v51 = vcombine.low (!%p956_p6), %v706_v44, %v708_v47  ;;  %v727_v52 = vmul.f32 (!%p956_p6), 0.6931472, %v1028_v49 }
 0x200   : > { %v718_v53 = vrot.slane (!%p956_p6), %v711_v51, %v717_v48  ;;  %v730_v55 = vcombine.low (!%p956_p6), %v725_v50, %v727_v52 }
 0x202   : > { %v720_v56 = vmul.f32 (!%p956_p6), %v718_v53, %v702_v46  ;;  %v737_v57 = vrot.slane (!%p956_p6), %v730_v55, %v717_v48 }
 0x204   : > { %v739_v58 = vmul.f32 (!%p956_p6), %v737_v57, %v721_v54 }
 0x206   : > { %v740_v61 = vadd.f32 (!%p956_p6), %v739_v58, %v720_v56 }
 0x208   : > { %v746_v62 = vrot.slane (!%p956_p6), %v740_v61, %v745_v59  ;;  %v750_v63 = vrot.slane (!%p956_p6), %v740_v61, %v749_v60 }
 0x20a   : > { %v753_v0 = vsel (!%p956_p6), %vm653_vm3, %v746_v62, 0.0  ;;  %v754_v1 = vsel (!%p956_p6), %vm653_vm3, %v750_v63, 0.0 }
 0x20b   : > { %v755_v2 = vadd.f32 (!%p956_p6), %v754_v1, %v753_v0 }
 0x20d   : > { %756 = vadd.xlane.f32.xlu0 (!%p956_p6), %v755_v2 }
 0x267   : > { %v658_v20 = vpop.xlane.xlu1 %657 }
 0x268   : > { %v659_v21 = vrot.slane %v658_v20, 4 }
 0x26a   : > { %v660_v22 = vadd.f32 %v659_v21, %v658_v20 }
 0x26c   : > { %v661_v23 = vrot.slane %v660_v22, 2 }
 0x26d   : > { %v686_v24 = vpop.xlane.xlu0 %685 }
 0x26e   : > { %v687_v25 = vrot.slane %v686_v24, 4  ;;  %v662_v26 = vadd.f32 %v661_v23, %v660_v22 }
 0x270   : > { %v688_v27 = vadd.f32 %v687_v25, %v686_v24  ;;  %v663_v28 = vrot.slane %v662_v26, 1 }
 0x272   : > { %v689_v29 = vrot.slane %v688_v27, 2  ;;  %v664_v30 = vadd.f32 %v663_v28, %v662_v26 }
 0x274   : > { %v690_v31 = vadd.f32 %v689_v29, %v688_v27  ;;  %974 = vpush %v664_v30 }
 0x276   : > { %v691_v32 = vrot.slane %v690_v31, 1 }
 0x278   : > { %v692_v33 = vadd.f32 %v691_v32, %v690_v31 }
 0x27a   : > { %976 = vpush %v692_v33 }
 0x29a   : > { %v757_v3 = vpop.xlane.xlu0 (!%p956_p6), %756 }
 0x29b   : > { %v758_v4 = vrot.slane (!%p956_p6), %v757_v3, 4 }
 0x29d   : > { %v759_v5 = vadd.f32 (!%p956_p6), %v758_v4, %v757_v3 }
 0x29f   : > { %v760_v6 = vrot.slane (!%p956_p6), %v759_v5, 2 }
 0x2a1   : > { %v761_v7 = vadd.f32 (!%p956_p6), %v760_v6, %v759_v5 }
 0x2a3   : > { %v762_v8 = vrot.slane (!%p956_p6), %v761_v7, 1 }
 0x2a5   : > { %s975_s28 = spop %974  ;;  %v763_v9 = vadd.f32 (!%p956_p6), %v762_v8, %v761_v7 }
 0x2a6   : > { %668 = sst [smem:[#allocation2]] %s975_s28  ;;  %700 = sbr.rel (%p956_p6) target bundleno = 732 (0x2dc), region = 52 }
 0x2a7   : > { %978 = vpush (!%p956_p6), %v763_v9 }
 0x2ab   : > { %s977_s20 = spop %976 }
 0x2ac   : > { %696 = sst [smem:[#allocation2 + $0x1]] %s977_s20 }
 0x2d8   : > { %s979_s19 = spop %978 }
 0x2d9   : > { %s765_s21 = sadd.f32 %s979_s19, %s957_s24 }
 0x2db   : > { %767 = sst [smem:[#allocation2 + $0x2]] %s765_s21 }
 0x2dc PF: > { %v774_v10 = vand.u32 127, %v629_v11  ;;  %s778_s22 = sld [smem:[#allocation2]]  ;;  %s958_s23 = sld [smem:[#allocation2 + $0x1]]  ;;  %vm775_vm5 = vcmp.eq.s32.totalorder %v1160_v13, 0 }
 0x2dd   : > { %s959_s29 = sld [smem:[#allocation2 + $0x2]] }
 0x2de   : > { %vm776_vm6 = vcmp.eq.s32.totalorder %v774_v10, 0  ;;  %vm781_vm7 = vcmp.eq.s32.totalorder %v774_v10, 1  ;;  %vm786_vm8 = vcmp.eq.s32.totalorder %v774_v10, 2 }
 0x2df   : > { %vm777_vm9 = vmand %vm775_vm5, %vm776_vm6 }
 0x2e0   : > { %vm782_vm10 = vmand %vm775_vm5, %vm781_vm7 }
 0x2e1   : > { %vm787_vm11 = vmand %vm775_vm5, %vm786_vm8 }
 0x2e2   : > { %v779_v12 = vstv %s778_s22  ;;  %v784_v14 = vstv %s958_s23 }
 0x2e3   : > { %v780_v15 = vsel %vm777_vm9, %v779_v12, 0.0  ;;  %v789_v16 = vstv %s959_s29 }
 0x2e4   : > { %v785_v17 = vsel %vm782_vm10, %v784_v14, %v780_v15 }
 0x2e5   : > { %v790_v18 = vsel %vm787_vm11, %v789_v16, %v785_v17 }
 0x2e6   : > { %791 = vst [vmem:[%s1133_s16] sm:$0xff] %v790_v18 }
 0x2e7 PF: > { %s18_s26 = sadd.s32 1, %s1051_s26   ;;  %s1195_s24 = smov %s1047_s25 }
 0x2e8   : > { %p15_p7 = scmp.ge.s32.totalorder %s18_s26, 8   ;;  %s1196_s25 = smov %s1198_s27 }
 0x2ea   :  { %17 = sbr.rel (!%p15_p7) target bundleno = 2 (0x2), region = 110 }

</bundles_post_ra>
